<compile_context>
chip_gen: v6e
topology: v6e:2x2x1
jax: 0.10.0
libtpu: 0.0.40
codegen_flags: <defaults>
</compile_context>

<pallas_src>
import math

import jax
import jax.numpy as jnp
from jax.experimental import pallas as pl
from jax.experimental.pallas import tpu as pltpu

MXU_DTYPE = jnp.bfloat16   # MXU operand dtype; accumulation is always f32


# ---------------------------------------------------------------------------
# Fused patch-embed + attention kernel
# ---------------------------------------------------------------------------

def _make_fused_kernel(num_heads, head_dim, mxu_dtype):
    def kernel(patches_ref, w_ref, add_ref, o_ref):
        # patches_ref: (1, 3, N, PPC) mxu  -- per-batch contiguous HBM slab
        # w_ref:       (3, PPC, D)    mxu  -- Q weights pre-scaled by 1/sqrt(hd)
        # add_ref:     (3, N, D)      f32  -- conv bias + PE (Q entry pre-scaled)
        # o_ref:       (1, N, D)      f32
        # ---- fused Q/K/V patch-embed projection: one 3-way batched MXU dot ----
        qkv = jnp.einsum('knc,kcd->knd', patches_ref[0], w_ref[...],
                         preferred_element_type=jnp.float32)          # (3, N, D) f32
        qkv = (qkv + add_ref[...]).astype(mxu_dtype)                   # (3, N, D)

        # ---- one head-major gather per projection (lane slices stacked onto a
        #      new leading batch axis), then batched-over-heads attention dots ----
        def heads(t):  # (N, D) -> (H, N, hd)
            return jnp.stack(
                [t[:, h * head_dim:(h + 1) * head_dim] for h in range(num_heads)],
                axis=0)

        qh, kh, vh = heads(qkv[0]), heads(qkv[1]), heads(qkv[2])

        # scores = q @ k^T (scale already folded into q); contract last dims,
        # no explicit transpose, H as the dot batch dim.
        scores = jnp.einsum('hqd,hkd->hqk', qh, kh,
                            preferred_element_type=jnp.float32)        # (H, N, N)
        m = jnp.max(scores, axis=-1, keepdims=True)
        e = jnp.exp(scores - m)                                         # f32 softmax
        p = e * pl.reciprocal(jnp.sum(e, axis=-1, keepdims=True), approx=True)
        # TODO(synk): training-mode dropout (p=0.3) on attention weights not
        # implemented in-kernel; it is the identity at inference time.
        ctx = jnp.einsum('hqk,hkd->hqd', p.astype(mxu_dtype), vh,
                         preferred_element_type=jnp.float32)            # (H, N, hd)

        # single lane-dense (N, D) store per batch step (all heads fused)
        o_ref[0] = jnp.concatenate([ctx[h] for h in range(num_heads)], axis=-1)

    return kernel


def vision_attention_pallas(patches, w, add, num_heads):
    """patches: (B, 3, N, PPC), w: (3, PPC, D), add: (3, N, D) -> (B, N, D) f32."""
    B, _, N, PPC = patches.shape
    D = w.shape[-1]
    head_dim = D // num_heads
    kernel = _make_fused_kernel(num_heads, head_dim, MXU_DTYPE)
    return pl.pallas_call(
        kernel,
        out_shape=jax.ShapeDtypeStruct((B, N, D), jnp.float32),
        grid_spec=pltpu.PrefetchScalarGridSpec(
            num_scalar_prefetch=0,
            grid=(B,),
            in_specs=[
                pl.BlockSpec((1, 3, N, PPC), lambda b: (b, 0, 0, 0)),
                pl.BlockSpec((3, PPC, D), lambda b: (0, 0, 0)),
                pl.BlockSpec((3, N, D), lambda b: (0, 0, 0)),
            ],
            out_specs=pl.BlockSpec((1, N, D), lambda b: (b, 0, 0)),
        ),
        compiler_params=pltpu.CompilerParams(
            dimension_semantics=("parallel",)),
    )(patches, w, add)


# ---------------------------------------------------------------------------
# Glue (plain JAX): im2col, sinusoidal PE, parameter setup
# ---------------------------------------------------------------------------

def extract_patches_nchw(x, patch_size, dtype):
    """x: (B, C, H, W) NCHW -> (B, N, C*P*P), features in (c, i, j) order."""
    B, C, H, W = x.shape
    P = patch_size
    hp, wp = H // P, W // P
    x = x.reshape(B, C, hp, P, wp, P)
    x = jnp.transpose(x, (0, 2, 4, 1, 3, 5))          # (B, hp, wp, C, P, P)
    return x.reshape(B, hp * wp, C * P * P).astype(dtype)


def sinusoidal_pe(n, d):
    pos = jnp.arange(n, dtype=jnp.float32)[:, None]
    i = jnp.arange(0, d, 2, dtype=jnp.float32)
    div = jnp.exp(-math.log(10000.0) * i / d)
    pe = jnp.zeros((n, d), dtype=jnp.float32)
    pe = pe.at[:, 0::2].set(jnp.sin(pos * div))
    pe = pe.at[:, 1::2].set(jnp.cos(pos * div))
    return pe


class VisionAttentionPallas:
    def __init__(self, patch_size, qkv_channels, hidden_dim, num_heads, key):
        assert hidden_dim % num_heads == 0
        self.patch_size = patch_size
        self.hidden_dim = hidden_dim
        self.num_heads = num_heads
        self.head_dim = hidden_dim // num_heads
        self.scale = self.head_dim ** (-0.5)

        P = patch_size
        self.ppc = [c * P * P for c in qkv_channels]
        self.ppc_max = max(self.ppc)

        ws, bs = [], []
        for idx, c in enumerate(qkv_channels):
            key, k1, k2 = jax.random.split(key, 3)
            # torch Conv2d weight layout (D, C, P, P) -> flatten to (C*P*P, D)
            w = 0.02 * jax.random.normal(k1, (hidden_dim, c, P, P), jnp.float32)
            w = w.reshape(hidden_dim, c * P * P).T
            b = 0.02 * jax.random.normal(k2, (1, hidden_dim), jnp.float32)
            if idx == 0:                      # fold 1/sqrt(head_dim) into Q projection
                w = w * self.scale
                b = b * self.scale
            # zero-pad feature dim so Q/K/V weights stack even if channels differ
            w = jnp.pad(w, ((0, self.ppc_max - w.shape[0]), (0, 0)))
            ws.append(w)
            bs.append(b)
        self.w = jnp.stack(ws).astype(MXU_DTYPE)        # (3, PPC_max, D) bf16
        self.b = jnp.stack(bs)                          # (3, 1, D) f32 (Q pre-scaled)

    def __call__(self, q_img, k_img, v_img):
        P = self.patch_size
        patches = []
        for img in (q_img, k_img, v_img):
            p = extract_patches_nchw(img, P, MXU_DTYPE)             # (B, N, C*P*P)
            p = jnp.pad(p, ((0, 0), (0, 0), (0, self.ppc_max - p.shape[-1])))
            patches.append(p)
        # stack on axis=1 -> (B, 3, N, PPC): each grid step reads ONE contiguous slab
        patches = jnp.stack(patches, axis=1)
        _, _, N, _ = patches.shape

        pe = sinusoidal_pe(N, self.hidden_dim)                      # (N, D)
        pe_stack = jnp.stack([pe * self.scale, pe, pe])             # Q entry pre-scaled
        add = self.b + pe_stack                                     # (3, N, D) f32

        return vision_attention_pallas(patches, self.w, add, self.num_heads)


if __name__ == "__main__":
    key = jax.random.PRNGKey(0)
    key, kq, kk, kv, kp = jax.random.split(key, 5)

    B, C, H, W = 2, 4, 16, 16          # NCHW images
    patch_size = 4
    hidden_dim = 32
    num_heads = 4

    module = VisionAttentionPallas(
        patch_size=patch_size, qkv_channels=[C, C, C],
        hidden_dim=hidden_dim, num_heads=num_heads, key=kp)

    q_img = jax.random.normal(kq, (B, C, H, W), dtype=jnp.float32)
    k_img = jax.random.normal(kk, (B, C, H, W), dtype=jnp.float32)
    v_img = jax.random.normal(kv, (B, C, H, W), dtype=jnp.float32)

    out = jax.block_until_ready(module(q_img, k_img, v_img))
    assert out.shape == (B, (H // patch_size) * (W // patch_size), hidden_dim)
    assert bool(jnp.all(jnp.isfinite(out)))
    print("KERNEL_OK")
</pallas_src>

<mosaic_0001>
module attributes {stable_mosaic.version = 11 : i64} {
  func.func @kernel(%arg0: i32, %arg1: memref<1x3x16x64xbf16, #tpu.memory_space<vmem>>, %arg2: memref<3x64x32xbf16, #tpu.memory_space<vmem>>, %arg3: memref<3x16x32xf32, #tpu.memory_space<vmem>>, %arg4: memref<1x16x32xf32, #tpu.memory_space<vmem>>) attributes {dimension_semantics = [#tpu.dimension_semantics<parallel>], iteration_bounds = array<i64: 2>, scalar_prefetch = 0 : i64, scratch_operands = 0 : i64, tpu.core_type = #tpu.core_type<tc>, window_params = [{transform_indices = @transform_0, window_bounds = array<i64: 1, 3, 16, 64>}, {pipeline_mode = #tpu.pipeline_mode<synchronous>, transform_indices = @transform_1, window_bounds = array<i64: 3, 64, 32>}, {pipeline_mode = #tpu.pipeline_mode<synchronous>, transform_indices = @transform_2, window_bounds = array<i64: 3, 16, 32>}, {transform_indices = @transform_3, window_bounds = array<i64: 1, 16, 32>}]} {
    %c0 = arith.constant 0 : index
    %c0_0 = arith.constant 0 : index
    %c0_1 = arith.constant 0 : index
    %c0_2 = arith.constant 0 : index
    %0 = vector.load %arg1[%c0, %c0_0, %c0_1, %c0_2] : memref<1x3x16x64xbf16, #tpu.memory_space<vmem>>, vector<1x3x16x64xbf16>
    %1 = vector.shape_cast %0 : vector<1x3x16x64xbf16> to vector<3x16x64xbf16>
    %c0_3 = arith.constant 0 : index
    %c0_4 = arith.constant 0 : index
    %c0_5 = arith.constant 0 : index
    %2 = vector.load %arg2[%c0_3, %c0_4, %c0_5] : memref<3x64x32xbf16, #tpu.memory_space<vmem>>, vector<3x64x32xbf16>
    "tpu.trace_start"() <{level = 10 : i32, message = "knc,kcd->knd"}> : () -> ()
    %cst = arith.constant dense<0.000000e+00> : vector<3x16x32xf32>
    %3 = tpu.matmul %1, %2, %cst {dimension_numbers = #tpu.dot_dimension_numbers<[2], [1], [1], [2], [0, 0, 0, 1, 1, 2], [0], [0]>} : vector<3x16x64xbf16>, vector<3x64x32xbf16>, vector<3x16x32xf32> -> vector<3x16x32xf32>
    "tpu.trace_stop"() : () -> ()
    %c0_6 = arith.constant 0 : index
    %c0_7 = arith.constant 0 : index
    %c0_8 = arith.constant 0 : index
    %4 = vector.load %arg3[%c0_6, %c0_7, %c0_8] : memref<3x16x32xf32, #tpu.memory_space<vmem>>, vector<3x16x32xf32>
    %5 = arith.addf %3, %4 : vector<3x16x32xf32>
    %6 = arith.truncf %5 : vector<3x16x32xf32> to vector<3x16x32xbf16>
    %7 = vector.extract_strided_slice %6 {offsets = [0, 0, 0], sizes = [1, 16, 32], strides = [1, 1, 1]} : vector<3x16x32xbf16> to vector<1x16x32xbf16>
    %8 = vector.shape_cast %7 : vector<1x16x32xbf16> to vector<16x32xbf16>
    %9 = vector.extract_strided_slice %8 {offsets = [0, 0], sizes = [16, 8], strides = [1, 1]} : vector<16x32xbf16> to vector<16x8xbf16>
    %10 = vector.extract_strided_slice %8 {offsets = [0, 8], sizes = [16, 8], strides = [1, 1]} : vector<16x32xbf16> to vector<16x8xbf16>
    %11 = vector.extract_strided_slice %8 {offsets = [0, 16], sizes = [16, 8], strides = [1, 1]} : vector<16x32xbf16> to vector<16x8xbf16>
    %12 = vector.extract_strided_slice %8 {offsets = [0, 24], sizes = [16, 8], strides = [1, 1]} : vector<16x32xbf16> to vector<16x8xbf16>
    %13 = vector.shape_cast %9 : vector<16x8xbf16> to vector<1x16x8xbf16>
    %14 = vector.shape_cast %10 : vector<16x8xbf16> to vector<1x16x8xbf16>
    %15 = vector.shape_cast %11 : vector<16x8xbf16> to vector<1x16x8xbf16>
    %16 = vector.shape_cast %12 : vector<16x8xbf16> to vector<1x16x8xbf16>
    %17 = tpu.concatenate %13, %14, %15, %16 in 0 : vector<1x16x8xbf16>, vector<1x16x8xbf16>, vector<1x16x8xbf16>, vector<1x16x8xbf16> -> vector<4x16x8xbf16>
    %18 = vector.extract_strided_slice %6 {offsets = [1, 0, 0], sizes = [1, 16, 32], strides = [1, 1, 1]} : vector<3x16x32xbf16> to vector<1x16x32xbf16>
    %19 = vector.shape_cast %18 : vector<1x16x32xbf16> to vector<16x32xbf16>
    %20 = vector.extract_strided_slice %19 {offsets = [0, 0], sizes = [16, 8], strides = [1, 1]} : vector<16x32xbf16> to vector<16x8xbf16>
    %21 = vector.extract_strided_slice %19 {offsets = [0, 8], sizes = [16, 8], strides = [1, 1]} : vector<16x32xbf16> to vector<16x8xbf16>
    %22 = vector.extract_strided_slice %19 {offsets = [0, 16], sizes = [16, 8], strides = [1, 1]} : vector<16x32xbf16> to vector<16x8xbf16>
    %23 = vector.extract_strided_slice %19 {offsets = [0, 24], sizes = [16, 8], strides = [1, 1]} : vector<16x32xbf16> to vector<16x8xbf16>
    %24 = vector.shape_cast %20 : vector<16x8xbf16> to vector<1x16x8xbf16>
    %25 = vector.shape_cast %21 : vector<16x8xbf16> to vector<1x16x8xbf16>
    %26 = vector.shape_cast %22 : vector<16x8xbf16> to vector<1x16x8xbf16>
    %27 = vector.shape_cast %23 : vector<16x8xbf16> to vector<1x16x8xbf16>
    %28 = tpu.concatenate %24, %25, %26, %27 in 0 : vector<1x16x8xbf16>, vector<1x16x8xbf16>, vector<1x16x8xbf16>, vector<1x16x8xbf16> -> vector<4x16x8xbf16>
    %29 = vector.extract_strided_slice %6 {offsets = [2, 0, 0], sizes = [1, 16, 32], strides = [1, 1, 1]} : vector<3x16x32xbf16> to vector<1x16x32xbf16>
    %30 = vector.shape_cast %29 : vector<1x16x32xbf16> to vector<16x32xbf16>
    %31 = vector.extract_strided_slice %30 {offsets = [0, 0], sizes = [16, 8], strides = [1, 1]} : vector<16x32xbf16> to vector<16x8xbf16>
    %32 = vector.extract_strided_slice %30 {offsets = [0, 8], sizes = [16, 8], strides = [1, 1]} : vector<16x32xbf16> to vector<16x8xbf16>
    %33 = vector.extract_strided_slice %30 {offsets = [0, 16], sizes = [16, 8], strides = [1, 1]} : vector<16x32xbf16> to vector<16x8xbf16>
    %34 = vector.extract_strided_slice %30 {offsets = [0, 24], sizes = [16, 8], strides = [1, 1]} : vector<16x32xbf16> to vector<16x8xbf16>
    %35 = vector.shape_cast %31 : vector<16x8xbf16> to vector<1x16x8xbf16>
    %36 = vector.shape_cast %32 : vector<16x8xbf16> to vector<1x16x8xbf16>
    %37 = vector.shape_cast %33 : vector<16x8xbf16> to vector<1x16x8xbf16>
    %38 = vector.shape_cast %34 : vector<16x8xbf16> to vector<1x16x8xbf16>
    %39 = tpu.concatenate %35, %36, %37, %38 in 0 : vector<1x16x8xbf16>, vector<1x16x8xbf16>, vector<1x16x8xbf16>, vector<1x16x8xbf16> -> vector<4x16x8xbf16>
    "tpu.trace_start"() <{level = 10 : i32, message = "hqd,hkd->hqk"}> : () -> ()
    %cst_9 = arith.constant dense<0.000000e+00> : vector<4x16x16xf32>
    %40 = tpu.matmul %17, %28, %cst_9 {dimension_numbers = #tpu.dot_dimension_numbers<[2], [2], [1], [1], [0, 0, 0, 1, 1, 1], [0], [0]>} : vector<4x16x8xbf16>, vector<4x16x8xbf16>, vector<4x16x16xf32> -> vector<4x16x16xf32>
    "tpu.trace_stop"() : () -> ()
    %cst_10 = arith.constant dense<0xFF800000> : vector<4x16xf32>
    %41 = vector.multi_reduction <maximumf>, %40, %cst_10 [2] : vector<4x16x16xf32> to vector<4x16xf32>
    %42 = vector.shape_cast %41 : vector<4x16xf32> to vector<4x16x1xf32>
    %43 = vector.broadcast %42 : vector<4x16x1xf32> to vector<4x16x16xf32>
    %44 = arith.subf %40, %43 : vector<4x16x16xf32>
    %45 = math.exp %44 : vector<4x16x16xf32>
    %cst_11 = arith.constant dense<0.000000e+00> : vector<4x16xf32>
    %46 = vector.multi_reduction <add>, %45, %cst_11 [2] : vector<4x16x16xf32> to vector<4x16xf32>
    %47 = vector.shape_cast %46 : vector<4x16xf32> to vector<4x16x1xf32>
    %48 = tpu.reciprocal %47 {approx = true} : vector<4x16x1xf32> -> vector<4x16x1xf32>
    %49 = vector.broadcast %48 : vector<4x16x1xf32> to vector<4x16x16xf32>
    %50 = arith.mulf %45, %49 : vector<4x16x16xf32>
    %51 = arith.truncf %50 : vector<4x16x16xf32> to vector<4x16x16xbf16>
    "tpu.trace_start"() <{level = 10 : i32, message = "hqk,hkd->hqd"}> : () -> ()
    %cst_12 = arith.constant dense<0.000000e+00> : vector<4x16x8xf32>
    %52 = tpu.matmul %51, %39, %cst_12 {dimension_numbers = #tpu.dot_dimension_numbers<[2], [1], [1], [2], [0, 0, 0, 1, 1, 2], [0], [0]>} : vector<4x16x16xbf16>, vector<4x16x8xbf16>, vector<4x16x8xf32> -> vector<4x16x8xf32>
    "tpu.trace_stop"() : () -> ()
    %53 = vector.extract_strided_slice %52 {offsets = [0, 0, 0], sizes = [1, 16, 8], strides = [1, 1, 1]} : vector<4x16x8xf32> to vector<1x16x8xf32>
    %54 = vector.shape_cast %53 : vector<1x16x8xf32> to vector<16x8xf32>
    %55 = vector.extract_strided_slice %52 {offsets = [1, 0, 0], sizes = [1, 16, 8], strides = [1, 1, 1]} : vector<4x16x8xf32> to vector<1x16x8xf32>
    %56 = vector.shape_cast %55 : vector<1x16x8xf32> to vector<16x8xf32>
    %57 = vector.extract_strided_slice %52 {offsets = [2, 0, 0], sizes = [1, 16, 8], strides = [1, 1, 1]} : vector<4x16x8xf32> to vector<1x16x8xf32>
    %58 = vector.shape_cast %57 : vector<1x16x8xf32> to vector<16x8xf32>
    %59 = vector.extract_strided_slice %52 {offsets = [3, 0, 0], sizes = [1, 16, 8], strides = [1, 1, 1]} : vector<4x16x8xf32> to vector<1x16x8xf32>
    %60 = vector.shape_cast %59 : vector<1x16x8xf32> to vector<16x8xf32>
    %61 = tpu.concatenate %54, %56, %58, %60 in 1 : vector<16x8xf32>, vector<16x8xf32>, vector<16x8xf32>, vector<16x8xf32> -> vector<16x32xf32>
    %c0_13 = arith.constant 0 : index
    %c0_14 = arith.constant 0 : index
    %c0_15 = arith.constant 0 : index
    %62 = vector.load %arg4[%c0_13, %c0_14, %c0_15] : memref<1x16x32xf32, #tpu.memory_space<vmem>>, vector<1x16x32xf32>
    %63 = vector.shape_cast %62 : vector<1x16x32xf32> to vector<16x32xf32>
    %64 = vector.shape_cast %61 : vector<16x32xf32> to vector<1x16x32xf32>
    tpu.vector_store %arg4[%c0_13, %c0_14, %c0_15], %64 {strides = array<i32>} : memref<1x16x32xf32, #tpu.memory_space<vmem>>, vector<1x16x32xf32>,
    return
  }
  func.func @transform_0(%arg0: i32) -> (i32, i32, i32, i32) {
    %c0_i32 = arith.constant 0 : i32
    %c0_i32_0 = arith.constant 0 : i32
    %c0_i32_1 = arith.constant 0 : i32
    %c0_i32_2 = arith.constant 0 : i32
    return %arg0, %c0_i32, %c0_i32_0, %c0_i32_1 : i32, i32, i32, i32
  }
  func.func @transform_1(%arg0: i32) -> (i32, i32, i32) {
    %c0_i32 = arith.constant 0 : i32
    %c0_i32_0 = arith.constant 0 : i32
    %c0_i32_1 = arith.constant 0 : i32
    %c0_i32_2 = arith.constant 0 : i32
    return %c0_i32, %c0_i32_0, %c0_i32_1 : i32, i32, i32
  }
  func.func @transform_2(%arg0: i32) -> (i32, i32, i32) {
    %c0_i32 = arith.constant 0 : i32
    %c0_i32_0 = arith.constant 0 : i32
    %c0_i32_1 = arith.constant 0 : i32
    %c0_i32_2 = arith.constant 0 : i32
    return %c0_i32, %c0_i32_0, %c0_i32_1 : i32, i32, i32
  }
  func.func @transform_3(%arg0: i32) -> (i32, i32, i32) {
    %c0_i32 = arith.constant 0 : i32
    %c0_i32_0 = arith.constant 0 : i32
    %c0_i32_1 = arith.constant 0 : i32
    return %arg0, %c0_i32, %c0_i32_0 : i32, i32, i32
  }
}

</mosaic_0001>

<bundles_post_ra>
// kernel: tpu_custom_call.1
= control target key start
LH: loop header
LB: loop body
LE: loop exit
PB: predicated region body
PF: predicated region fallthrough
CT: control target
= control target key end

     0   :  { %8 = vsyncpa [#allocation3], 0  ;;  %s1615_s0 = inlined_call_operand.vmem [shape: bf16[2,3,16,64], index: 0, kind: input, shape index: {}]   ;;  %s1616_s1 = inlined_call_operand.vmem [shape: bf16[3,64,32], index: 1, kind: input, shape index: {}]   ;;  %s1617_s2 = inlined_call_operand.vmem [shape: f32[3,16,32], index: 2, kind: input, shape index: {}]   ;;  %s1618_s3 = inlined_call_operand.hbm [shape: f32[2,16,32], index: 3, kind: output, shape index: {}]  }
   0x1   :  { %10 = vsyncpa [#allocation3 + $0x1], 0  ;;  %s1362_s12 = smov 0   ;;  %s1364_s13 = smov 0  }
   0x2   :  { %s1366_s14 = smov 0   ;;  %s1368_s15 = smov 0  }
   0x3 LB: > { %s1383_s16 = sadd.s32 4294967295, %s1330_s15   ;;  %s1021_s17 = sadd.s32 4294967294, %s1330_s15   ;;  %s1330_s15 = sphi %s1368_s15, %s1624_s15   ;;  %s1326_s14 = sphi %s1366_s14, %s1623_s14   ;;  %s1322_s13 = sphi %s1364_s13, %s1622_s13   ;;  %s1318_s12 = sphi %s1362_s12, %s1621_s12  }
   0x4   : > { %s1387_s18 = sadd.s32 1, %s1330_s15   ;;  %s91_s19 = sadd.s32 1, %s1326_s14 }
   0x5   : > { %s88_s20 = ssub.s32 %s1330_s15, %s1387_s18  ;;  %p101_p0 = scmp.ne.s32.totalorder %s1326_s14, %s1322_s13 }
   0x6   : > { %p89_p1 = scmp.eq.s32.totalorder %s88_s20, 0  ;;  %p102_p2 = scmp.eq.s32.totalorder %s1383_s16, 1 }
   0x7   : > { %p107_p3 = scmp.ne.s32.totalorder %s1322_s13, %s1318_s12  ;;  %p108_p4 = scmp.eq.s32.totalorder %s1021_s17, 1 }
   0x8   : > { %s1398_s21 = scalar_select %p89_p1, %s1326_s14, %s91_s19  }
   0x9   : > { %p1400_p5 = por %p102_p2, %p101_p0  ;;  %p1404_p6 = por %p108_p4, %p107_p3 }
   0xa   : > { %p1024_p7 = scmp.ge.s32.totalorder %s1330_s15, 1  ;;  %p140_p8 = scmp.lt.s32.totalorder %s1330_s15, 3 }
   0xc   : > { %p141_p9 = pnand %p1024_p7, %p140_p8 }
   0xd   : > { %p164_p10 = scmp.lt.s32.totalorder (!%p141_p9), %s1383_s16, 1  ;;  %s1334_s25 = smov (!%p141_p9), 120  }
   0xe   : > { %144 = sbr.rel (%p141_p9) target bundleno = 1208 (0x4b8), region = 32  ;;  %s1335_s26 = smov (!%p141_p9), 104  }
   0xf   : > { %s1336_s27 = smov (!%p141_p9), 112   ;;  %s1338_s6 = smov (!%p141_p9), 16  }
  0x10   : > { %s1339_s7 = smov (!%p141_p9), 24   ;;  %s1058_s17 = sshll.u32 (!%p141_p9), %s1383_s16, 8 }
  0x11   : > { %s1571_s24 = scalar_lea.hbm (!%p141_p9), %s1618_s3, %s1058_s17 }
  0x13   : > { %v1223_v0 = vld [vmem:[%s1616_s1 + $0x18] sm:$0xff]   ;;  %v1332_v1 = vmov 0.0   ;;  %v1225_v3 = vld [vmem:[%s1616_s1 + $0x10] sm:$0xff]   ;;  %vm1333_vm0 = vmmov 0   ;;  %s165_s5 = scalar_select %p164_p10, %s1383_s16, 1  ;;  %v1227_v5 = vld [vmem:[%s1616_s1 + $0x8] sm:$0xff]  }
  0x14   : > { %1090 = vmatprep.subr.bf16.mxu0 %v1332_v1  ;;  %1102 = vmatprep.subr.bf16.mxu1 %v1332_v1  ;;  %v1224_v2 = vld [vmem:[%s1616_s1 + $0x38] sm:$0xff]   ;;  %v1226_v4 = vld [vmem:[%s1616_s1 + $0x30] sm:$0xff]   ;;  %v1228_v6 = vld [vmem:[%s1616_s1 + $0x28] sm:$0xff]   ;;  %vm235_vm1 = vcmask 523264   ;;  %vm453_vm2 = vcmask 64512   ;;  %vm642_vm3 = vcmask 130048  }
  0x15   : > { %1091 = vmatpush3.bf16.msra.mxu0 %v1223_v0  ;;  %1098 = vmatprep.mubr.msk.bf16.mxu0 %vm1333_vm0, %v1332_v1  ;;  %s1174_s8 = smul.u32 24, %s165_s5  ;;  %v1229_v7 = vld [vmem:[%s1616_s1] sm:$0xff]   ;;  %v1233_v11 = vld [vmem:[%s1616_s1 + $0x58] sm:$0xff]   ;;  %v1234_v12 = vld [vmem:[%s1616_s1 + $0x50] sm:$0xff]   ;;  %s1337_s5 = smov 8   ;;  %vm939_vm4 = vcmask 195584  }
  0x16   : > { %1103 = vmatpush3.bf16.msra.mxu1 %v1224_v2  ;;  %1092 = vmatprep.subr.bf16.mxu0 %v1332_v1  ;;  %v1230_v8 = vld [vmem:[%s1616_s1 + $0x20] sm:$0xff]   ;;  %v1235_v13 = vld [vmem:[%s1616_s1 + $0x48] sm:$0xff]   ;;  %v202_v22 = vld [vmem:[%s1617_s2 + $0x10] sm:$0xff]  ;;  %vm942_vm5 = vcmask 261120  }
  0x17   : > { %1104 = vmatprep.subr.bf16.mxu1 %v1332_v1  ;;  %1110 = vmatprep.mubr.msk.bf16.mxu1 %vm1333_vm0, %v1332_v1  ;;  %s168_s19 = scalar_lea.vmem %s1615_s0, %s1174_s8  ;;  %v1236_v14 = vld [vmem:[%s1616_s1 + $0x40] sm:$0xff]   ;;  %v201_v20 = vld [vmem:[%s1617_s2 + $0x8] sm:$0xff]  ;;  %v203_v24 = vld [vmem:[%s1617_s2 + $0x18] sm:$0xff]  ;;  %s161_s8 = sand.u32 1, %s1322_s13  }
  0x18   : > { %v1231_v9 = vld [vmem:[%s168_s19] sm:$0xff]   ;;  %v1232_v10 = vld [vmem:[%s168_s19 + $0x8] sm:$0xff]   ;;  %v1237_v15 = vld [vmem:[%s168_s19 + $0x10] sm:$0xff]   ;;  %s1025_s9 = sshll.u32 %s161_s8, 4  ;;  %s1574_s16 = scalar_lea.sflag [#allocation3], %s161_s8 }
  0x19   : > { %1093 = vmatpush3.bf16.msra.mxu0 %v1225_v3  ;;  %v200_v16 = vld [vmem:[%s1617_s2] sm:$0xff]  ;;  %v205_v47 = vld [vmem:[%s1617_s2 + $0x28] sm:$0xff]  ;;  %s163_s10 = scalar_lea.vmem [#allocation2], %s1025_s9 }
  0x1a   : > { %1105 = vmatpush3.bf16.msra.mxu1 %v1226_v4  ;;  %1094 = vmatprep.subr.bf16.mxu0 %v1332_v1  ;;  %v204_v44 = vld [vmem:[%s1617_s2 + $0x20] sm:$0xff]  ;;  %s959_s11 = sshll.u32 %s163_s10, 4  ;;  %s1565_s11 = int_to_ptr.vmem [resolvable:$true] %s959_s11 }
  0x1b   : > { %1106 = vmatprep.subr.bf16.mxu1 %v1332_v1 }
  0x1d   : > { %1095 = vmatpush3.bf16.msra.mxu0 %v1227_v5 }
  0x1e   : > { %1107 = vmatpush3.bf16.msra.mxu1 %v1228_v6  ;;  %1096 = vmatprep.subr.bf16.mxu0 %v1332_v1 }
  0x1f   : > { %1108 = vmatprep.subr.bf16.mxu1 %v1332_v1 }
  0x21   : > { %1097 = vmatpush3.bf16.msra.mxu0 %v1229_v7 }
  0x22   : > { %1109 = vmatpush3.bf16.msra.mxu1 %v1230_v8  ;;  %1114 = vmatprep.subr.bf16.mxu0 %v1332_v1 }
  0x23   : > { %1126 = vmatprep.subr.bf16.mxu1 %v1332_v1 }
  0x24   : > { %1099 = vmatmul.mubr.msk.bf16.vlgmr.msra.gmra.mxu0 %vm235_vm1, %v1231_v9 }
  0x25   : > { %1111 = vmatmul.mubr.msk.bf16.vlgmr.msra.gmra.mxu1 %vm235_vm1, %v1232_v10  ;;  %1122 = vmatprep.mubr.msk.bf16.mxu0 %vm1333_vm0, %v1332_v1 }
  0x26   : > { %1128 = vmatprep.mubr.msk.bf16.mxu1 %vm1333_vm0, %v1332_v1  ;;  %1115 = vmatpush3.bf16.msra.mxu0 %v1233_v11 }
  0x27   : > { %1116 = vmatprep.subr.bf16.mxu0 %v1332_v1 }
  0x2a   : > { %1117 = vmatpush3.bf16.msra.mxu0 %v1234_v12 }
  0x2b   : > { %1118 = vmatprep.subr.bf16.mxu0 %v1332_v1 }
  0x2e   : > { %1119 = vmatpush3.bf16.msra.mxu0 %v1235_v13 }
  0x2f   : > { %1120 = vmatprep.subr.bf16.mxu0 %v1332_v1 }
  0x32   : > { %1121 = vmatpush3.bf16.msra.mxu0 %v1236_v14 }
  0x33   : > { %1138 = vmatprep.subr.bf16.mxu0 %v1332_v1 }
  0x35   : > { %1123 = vmatmul.mubr.msk.bf16.vlgmr.msra.gmra.mxu0 %vm235_vm1, %v1237_v15 }
  0x36   : > { %1140 = vmatprep.mubr.msk.bf16.mxu0 %vm1333_vm0, %v1332_v1 }
  0xe4   : > { %v273_v17 = vpop.f32.mrf.mxu0 }
  0xe5   : > { %v346_v18 = vpop.f32.mrf.mxu1  ;;  %v274_v21 = vadd.f32 %v273_v17, %v200_v16 }
  0xe6   : > { %v1100_v19 = vpop.f32.mrf.mxu0  ;;  %v347_v28 = vadd.f32 %v346_v18, %v202_v22 }
  0xe7   : > { %v1112_v23 = vpop.f32.mrf.mxu1 }
  0xe8   : > { %v276_v25 = vpop.f32.mrf.mxu0 }
  0xe9   : > { %v277_v26 = vadd.f32 %v276_v25, %v201_v20  ;;  %v349_v27 = vpop.f32.mrf.mxu1 }
  0xea   : > { %v350_v29 = vadd.f32 %v349_v27, %v203_v24  ;;  %v1101_v30 = vpop.f32.mrf.mxu0 }
  0xeb   : > { %v426_v31 = vpack.c.bf16 %v277_v26, %v274_v21  ;;  %v1113_v32 = vpop.f32.mrf.mxu1 }
  0xec   : > { %v427_v33 = vpack.c.bf16 %v350_v29, %v347_v28 }
  0xed   : > { %430 = vrot.lane.b32.xlu1 %v426_v31, %s1334_s25 }
  0xee   : > { %437 = vrot.lane.b32.xlu0 %v427_v33, %s1334_s25  ;;  %v458_v34 = vsel %vm453_vm2, %v427_v33, 0 }
  0xef   : > { %1127 = vmatpush3.bf16.xpose.msra.mxu1 %v458_v34 }
  0xf0   : > { %1132 = vmatprep.subr.bf16.mxu1 %v1332_v1 }
  0xf1   : > { %441 = vrot.lane.b32.xlu1 %v427_v33, %s1335_s26 }
  0xf2   : > { %439 = vrot.lane.b32.xlu0 %v427_v33, %s1336_s27 }
  0xf5   : > { %434 = vrot.lane.b32.xlu1 %v426_v31, %s1335_s26  ;;  %v419_v45 = vpop.f32.mrf.mxu0 }
  0xf6   : > { %432 = vrot.lane.b32.xlu0 %v426_v31, %s1336_s27  ;;  %1129 = vmatmul.mubr.msk.bf16.vlgmr.msra.gmra.mxu1 %vm453_vm2, %v426_v31  ;;  %v420_v48 = vadd.f32 %v419_v45, %v204_v44 }
  0xf7   : > { %1134 = vmatprep.mubr.msk.bf16.mxu1 %vm1333_vm0, %v1332_v1  ;;  %v1124_v46 = vpop.f32.mrf.mxu0 }
  0xf9   : > { %v422_v49 = vpop.f32.mrf.mxu0 }
  0xfa   : > { %v423_v50 = vadd.f32 %v422_v49, %v205_v47 }
  0xfb   : > { %v1125_v51 = vpop.f32.mrf.mxu0 }
  0xfc   : > { %v1522_v52 = vpack.c.bf16 %v423_v50, %v420_v48 }
 0x15f   : > { %v431_v36 = vpop.permute.xlu1 %430 }
 0x160   : > { %v438_v35 = vpop.permute.xlu0 %437 }
 0x161   : > { %v505_v37 = vsel %vm453_vm2, %v438_v35, 0 }
 0x162   : > { %1133 = vmatpush3.bf16.xpose.msra.mxu1 %v505_v37 }
 0x163   : > { %1144 = vmatprep.subr.bf16.mxu1 %v1332_v1  ;;  %v442_v40 = vpop.permute.xlu1 %441 }
 0x164   : > { %v440_v38 = vpop.permute.xlu0 %439  ;;  %v599_v41 = vsel %vm453_vm2, %v442_v40, 0 }
 0x165   : > { %v552_v39 = vsel %vm453_vm2, %v440_v38, 0 }
 0x166   : > { %1139 = vmatpush3.bf16.xpose.msra.mxu0 %v552_v39 }
 0x167   : > { %1150 = vmatprep.subr.bf16.mxu0 %v1332_v1  ;;  %v435_v43 = vpop.permute.xlu1 %434 }
 0x168   : > { %v433_v42 = vpop.permute.xlu0 %432 }
 0x169   : > { %1135 = vmatmul.mubr.msk.bf16.vlgmr.msra.gmra.mxu1 %vm453_vm2, %v431_v36 }
 0x16a   : > { %1145 = vmatpush3.bf16.xpose.msra.mxu1 %v599_v41  ;;  %1146 = vmatprep.mubr.msk.bf16.mxu1 %vm1333_vm0, %v1332_v1 }
 0x16b   : > { %1156 = vmatprep.subr.bf16.mxu1 %v1332_v1 }
 0x16d   : > { %1141 = vmatmul.mubr.msk.bf16.vlgmr.msra.gmra.mxu0 %vm453_vm2, %v433_v42 }
 0x16e   : > { %1152 = vmatprep.mubr.msk.bf16.mxu0 %vm1333_vm0, %v1332_v1  ;;  %1151 = vmatpush3.bf16.msra.mxu0 %v1522_v52 }
 0x16f   : > { %1162 = vmatprep.subr.bf16.mxu0 %v1332_v1 }
 0x171   : > { %1147 = vmatmul.mubr.msk.bf16.vlgmr.msra.gmra.mxu1 %vm453_vm2, %v435_v43 }
 0x172   : > { %1158 = vmatprep.mubr.msk.bf16.mxu1 %vm1333_vm0, %v1332_v1 }
 0x1b6   : > { %v494_v53 = vpop.f32.mrf.mxu1 }
 0x1b7   : > { %v643_v54 = vsel %vm642_vm3, %v494_v53, -inf }
 0x1b8   : > { %644 = vmax.xlane.f32.xlu0 %v643_v54  ;;  %v1130_v55 = vpop.f32.mrf.mxu1 }
 0x1ba   : > { %v497_v56 = vpop.f32.mrf.mxu1 }
 0x1bb   : > { %v646_v57 = vsel %vm642_vm3, %v497_v56, -inf }
 0x1bc   : > { %647 = vmax.xlane.f32.xlu1 %v646_v57  ;;  %v1131_v58 = vpop.f32.mrf.mxu1 }
 0x229   : > { %v541_v59 = vpop.f32.mrf.mxu1 }
 0x22a   : > { %v649_v60 = vsel %vm642_vm3, %v541_v59, -inf }
 0x22b   : > { %650 = vmax.xlane.f32.xlu0 %v649_v60  ;;  %v1136_v61 = vpop.f32.mrf.mxu1 }
 0x22d   : > { %v544_v62 = vpop.f32.mrf.mxu1  ;;  %v588_v63 = vpop.f32.mrf.mxu0 }
 0x22e   : > { %v652_v0 = vsel %vm642_vm3, %v544_v62, -inf  ;;  %v655_v2 = vsel %vm642_vm3, %v588_v63, -inf }
 0x22f   : > { %653 = vmax.xlane.f32.xlu0 %v652_v0  ;;  %v1137_v3 = vpop.f32.mrf.mxu1  ;;  %656 = vmax.xlane.f32.xlu1 %v655_v2  ;;  %v1142_v4 = vpop.f32.mrf.mxu0 }
 0x231   : > { %v591_v5 = vpop.f32.mrf.mxu0  ;;  %v635_v6 = vpop.f32.mrf.mxu1 }
 0x232   : > { %v661_v7 = vsel %vm642_vm3, %v635_v6, -inf  ;;  %v658_v8 = vsel %vm642_vm3, %v591_v5, -inf }
 0x233   : > { %v1148_v9 = vpop.f32.mrf.mxu1  ;;  %662 = vmax.xlane.f32.xlu1 %v661_v7  ;;  %659 = vmax.xlane.f32.xlu0 %v658_v8  ;;  %v1143_v10 = vpop.f32.mrf.mxu0 }
 0x235   : > { %v638_v11 = vpop.f32.mrf.mxu1 }
 0x236   : > { %v664_v12 = vsel %vm642_vm3, %v638_v11, -inf }
 0x237   : > { %v1149_v13 = vpop.f32.mrf.mxu1  ;;  %665 = vmax.xlane.f32.xlu0 %v664_v12 }
 0x241   : > { %v645_v17 = vpop.xlane.xlu0 %644 }
 0x242   : > { %v667_v18 = vsub.f32 %v494_v53, %v645_v17 }
 0x244   : > { %444 = vrot.lane.b32.xlu1 %v1522_v52, %s1334_s25  ;;  %v675_v19 = vmul.f32 1.442695, %v667_v18  ;;  %s1270_s25 = scalar_lea.vmem %s1565_s11, 256 }
 0x245   : > { %v648_v14 = vpop.xlane.xlu1 %647  ;;  %p1271_p11 = scmp.ne.s32.totalorder %s1565_s11, %s1270_s25 }
 0x246   : > { %v668_v15 = vsub.f32 %v497_v56, %v648_v14 }
 0x247   : > { %p1272_p12 = pnand %p1271_p11, %p1400_p5 }
 0x248   : > { %v677_v16 = vmul.f32 1.442695, %v668_v15 }
 0x249   : > { %p1273_p13 = pneg %p1272_p12 }
 0x24a   : > { %1238 = vpow2.f32 %v677_v16 }
 0x24b   : > { %1240 = vpow2.f32 %v675_v19 }
 0x257   : > { %v1239_v20 = vpop.eup %1238 }
 0x258   : > { %v694_v21 = vsel %vm642_vm3, %v1239_v20, 0.0  ;;  %v1241_v22 = vpop.eup %1240 }
 0x259   : > { %695 = vadd.xlane.f32.xlu0 %v694_v21  ;;  %v691_v23 = vsel %vm642_vm3, %v1241_v22, 0.0 }
 0x268   : > { %692 = vadd.xlane.f32.xlu1 %v691_v23 }
 0x2b4   : > { %v651_v24 = vpop.xlane.xlu0 %650 }
 0x2b5   : > { %v669_v25 = vsub.f32 %v541_v59, %v651_v24 }
 0x2b7   : > { %v679_v26 = vmul.f32 1.442695, %v669_v25 }
 0x2b8   : > { %v654_v27 = vpop.xlane.xlu0 %653  ;;  %v657_v28 = vpop.xlane.xlu1 %656 }
 0x2b9   : > { %1242 = vpow2.f32 %v679_v26  ;;  %v670_v29 = vsub.f32 %v544_v62, %v654_v27  ;;  %v671_v30 = vsub.f32 %v588_v63, %v657_v28 }
 0x2bb   : > { %v681_v31 = vmul.f32 1.442695, %v670_v29  ;;  %v683_v32 = vmul.f32 1.442695, %v671_v30 }
 0x2bc   : > { %v663_v33 = vpop.xlane.xlu1 %662  ;;  %v660_v34 = vpop.xlane.xlu0 %659 }
 0x2bd   : > { %1244 = vpow2.f32 %v681_v31  ;;  %v673_v35 = vsub.f32 %v635_v6, %v663_v33  ;;  %v672_v36 = vsub.f32 %v591_v5, %v660_v34 }
 0x2be   : > { %1246 = vpow2.f32 %v683_v32 }
 0x2bf   : > { %v687_v37 = vmul.f32 1.442695, %v673_v35  ;;  %v685_v38 = vmul.f32 1.442695, %v672_v36 }
 0x2c0   : > { %v445_v39 = vpop.permute.xlu1 %444  ;;  %v666_v40 = vpop.xlane.xlu0 %665 }
 0x2c1   : > { %1248 = vpow2.f32 %v687_v37  ;;  %v674_v41 = vsub.f32 %v638_v11, %v666_v40  ;;  %1157 = vmatpush3.bf16.msra.mxu1 %v445_v39 }
 0x2c2   : > { %1250 = vpow2.f32 %v685_v38  ;;  %1168 = vmatprep.subr.bf16.mxu1 %v1332_v1 }
 0x2c3   : > { %v689_v42 = vmul.f32 1.442695, %v674_v41 }
 0x2c5   : > { %1252 = vpow2.f32 %v689_v42 }
 0x2c6   : > { %v1243_v43 = vpop.eup %1242 }
 0x2c7   : > { %v697_v44 = vsel %vm642_vm3, %v1243_v43, 0.0 }
 0x2c8   : > { %698 = vadd.xlane.f32.xlu1 %v697_v44 }
 0x2ca   : > { %v1245_v45 = vpop.eup %1244 }
 0x2cb   : > { %v1247_v46 = vpop.eup %1246  ;;  %v700_v47 = vsel %vm642_vm3, %v1245_v45, 0.0 }
 0x2cc   : > { %v703_v48 = vsel %vm642_vm3, %v1247_v46, 0.0  ;;  %701 = vadd.xlane.f32.xlu0 %v700_v47 }
 0x2cd   : > { %704 = vadd.xlane.f32.xlu1 %v703_v48 }
 0x2ce   : > { %v1249_v49 = vpop.eup %1248 }
 0x2cf   : > { %v1251_v50 = vpop.eup %1250  ;;  %v709_v51 = vsel %vm642_vm3, %v1249_v49, 0.0 }
 0x2d0   : > { %v706_v53 = vsel %vm642_vm3, %v1251_v50, 0.0 }
 0x2d1   : > { %710 = vadd.xlane.f32.xlu1 %v709_v51  ;;  %707 = vadd.xlane.f32.xlu0 %v706_v53 }
 0x2d2   : > { %v1253_v54 = vpop.eup %1252 }
 0x2d3   : > { %v712_v55 = vsel %vm642_vm3, %v1253_v54, 0.0 }
 0x2d5   : > { %713 = vadd.xlane.f32.xlu0 %v712_v55 }
 0x2e2   : > { %450 = vrot.lane.b32.xlu1 %v1522_v52, %s1335_s26  ;;  %v696_v56 = vpop.xlane.xlu0 %695  ;;  %s1340_s26 = smov [#allocation2]  }
 0x2e3   : > { %1254 = vrcp.f32 %v696_v56 }
 0x2eb   : > { %447 = vrot.lane.b32.xlu0 %v1522_v52, %s1336_s27  ;;  %s1274_s27 = sshll.u32 %s1340_s26, 4  ;;  %s1275_s27 = int_to_ptr.vmem [resolvable:$false] %s1274_s27 }
 0x2ec   : > { %s1276_s28 = scalar_lea.vmem %s1275_s27, 512  ;;  %p1277_p0 = scmp.lt.s32.totalorder %s1565_s11, %s1275_s27 }
 0x2ed   : > { %p1278_p1 = scmp.lt.s32.totalorder %s1276_s28, %s1270_s25 }
 0x2ef   : > { %p1279_p2 = por %p1278_p1, %p1277_p0 }
 0x2f0   : > { %v1255_v58 = vpop.eup %1254 }
 0x2f1   : > { %v693_v57 = vpop.xlane.xlu1 %692  ;;  %v724_v61 = vmul.f32 %v1255_v58, %v1239_v20  ;;  %p1280_p3 = pnand %p1279_p2, %p1273_p13 }
 0x2f2   : > { %1256 = vrcp.f32 %v693_v57 }
 0x2ff   : > { %v1257_v59 = vpop.eup %1256 }
 0x300   : > { %v723_v60 = vmul.f32 %v1257_v59, %v1241_v22 }
 0x302   : > { %v731_v62 = vpack.c.bf16 %v724_v61, %v723_v60 }
 0x304   : > { %1153 = vmatmul.mubr.msk.bf16.vlgmr.msra.gmra.mxu0 %vm642_vm3, %v731_v62 }
 0x305   : > { %1164 = vmatprep.mubr.msk.bf16.mxu0 %vm1333_vm0, %v1332_v1 }
 0x351   : > { %v699_v63 = vpop.xlane.xlu1 %698 }
 0x352   : > { %1258 = vrcp.f32 %v699_v63 }
 0x355   : > { %v702_v0 = vpop.xlane.xlu0 %701 }
 0x356   : > { %v705_v2 = vpop.xlane.xlu1 %704  ;;  %1260 = vrcp.f32 %v702_v0 }
 0x357   : > { %1262 = vrcp.f32 %v705_v2 }
 0x35a   : > { %v711_v52 = vpop.xlane.xlu1 %710  ;;  %v708_v3 = vpop.xlane.xlu0 %707 }
 0x35b   : > { %1264 = vrcp.f32 %v708_v3 }
 0x35c   : > { %1266 = vrcp.f32 %v711_v52 }
 0x35e   : > { %v714_v4 = vpop.xlane.xlu0 %713  ;;  %v451_v12 = vpop.permute.xlu1 %450 }
 0x35f   : > { %1268 = vrcp.f32 %v714_v4  ;;  %v1259_v5 = vpop.eup %1258 }
 0x360   : > { %v725_v8 = vmul.f32 %v1259_v5, %v1243_v43 }
 0x362   : > { %v448_v6 = vpop.permute.xlu0 %447 }
 0x363   : > { %v1261_v7 = vpop.eup %1260  ;;  %1163 = vmatpush3.bf16.msra.mxu0 %v448_v6 }
 0x364   : > { %v726_v9 = vmul.f32 %v1261_v7, %v1245_v45  ;;  %v1263_v11 = vpop.eup %1262 }
 0x365   : > { %v727_v15 = vmul.f32 %v1263_v11, %v1247_v46 }
 0x366   : > { %v732_v10 = vpack.c.bf16 %v726_v9, %v725_v8 }
 0x368   : > { %1159 = vmatmul.mubr.msk.bf16.vlgmr.msra.gmra.mxu1 %vm642_vm3, %v732_v10  ;;  %v1265_v13 = vpop.eup %1264 }
 0x369   : > { %1169 = vmatpush3.bf16.msra.mxu1 %v451_v12  ;;  %1170 = vmatprep.mubr.msk.bf16.mxu1 %vm1333_vm0, %v1332_v1  ;;  %v1267_v14 = vpop.eup %1266  ;;  %v728_v16 = vmul.f32 %v1265_v13, %v1251_v50 }
 0x36a   : > { %v729_v19 = vmul.f32 %v1267_v14, %v1249_v49 }
 0x36b   : > { %v733_v18 = vpack.c.bf16 %v728_v16, %v727_v15 }
 0x36c   : > { %v1269_v17 = vpop.eup %1268 }
 0x36d   : > { %v730_v20 = vmul.f32 %v1269_v17, %v1253_v54  ;;  %1165 = vmatmul.mubr.msk.bf16.vlgmr.msra.gmra.mxu0 %vm642_vm3, %v733_v18 }
 0x36f   : > { %v734_v21 = vpack.c.bf16 %v730_v20, %v729_v19 }
 0x371   : > { %1171 = vmatmul.mubr.msk.bf16.vlgmr.msra.gmra.mxu1 %vm642_vm3, %v734_v21 }
 0x3c4   : > { %v772_v22 = vpop.f32.mrf.mxu0 }
 0x3c6   : > { %v1154_v23 = vpop.f32.mrf.mxu0 }
 0x3c8   : > { %v775_v24 = vpop.f32.mrf.mxu0 }
 0x3ca   : > { %v1155_v25 = vpop.f32.mrf.mxu0 }
 0x428   : > { %v816_v26 = vpop.f32.mrf.mxu1 }
 0x429   : > { %913 = vrot.lane.b32.xlu1 %v816_v26, %s1337_s5 }
 0x42a   : > { %v1160_v1 = vpop.f32.mrf.mxu1 }
 0x42c   : > { %v819_v27 = vpop.f32.mrf.mxu1 }
 0x42d   : > { %915 = vrot.lane.b32.xlu0 %v819_v27, %s1337_s5  ;;  %v860_v28 = vpop.f32.mrf.mxu0 }
 0x42e   : > { %v1161_v29 = vpop.f32.mrf.mxu1  ;;  %921 = vrot.lane.b32.xlu1 %v860_v28, %s1338_s6 }
 0x42f   : > { %v1166_v30 = vpop.f32.mrf.mxu0 }
 0x431   : > { %v904_v31 = vpop.f32.mrf.mxu1  ;;  %v863_v32 = vpop.f32.mrf.mxu0 }
 0x432   : > { %929 = vrot.lane.b32.xlu1 %v904_v31, %s1339_s7  ;;  %923 = vrot.lane.b32.xlu0 %v863_v32, %s1338_s6 }
 0x433   : > { %v1172_v33 = vpop.f32.mrf.mxu1  ;;  %v1167_v34 = vpop.f32.mrf.mxu0 }
 0x435   : > { %v907_v35 = vpop.f32.mrf.mxu1 }
 0x436   : > { %931 = vrot.lane.b32.xlu0 %v907_v35, %s1339_s7 }
 0x437   : > { %v1173_v36 = vpop.f32.mrf.mxu1 }
 0x49b   : > { %v914_v37 = vpop.permute.xlu1 %913 }
 0x49c   : > { %v935_v40 = vsel %vm453_vm2, %v772_v22, %v914_v37 }
 0x49f   : > { %v916_v38 = vpop.permute.xlu0 %915 }
 0x4a0   : > { %v922_v39 = vpop.permute.xlu1 %921  ;;  %v936_v45 = vsel %vm453_vm2, %v775_v24, %v916_v38 }
 0x4a1   : > { %v937_v41 = vsel %vm642_vm3, %v935_v40, %v922_v39 }
 0x4a4   : > { %v930_v42 = vpop.permute.xlu1 %929  ;;  %v924_v43 = vpop.permute.xlu0 %923 }
 0x4a5   : > { %v940_v44 = vsel %vm939_vm4, %v937_v41, %v930_v42  ;;  %v938_v46 = vsel %vm642_vm3, %v936_v45, %v924_v43 }
 0x4a6   : > { %943 = vst.msk [vmem:[%s163_s10] sm:$0xff] %vm942_vm5, %v940_v44 }
 0x4a8   : > { %v932_v47 = vpop.permute.xlu0 %931 }
 0x4a9   : > { %v941_v48 = vsel %vm939_vm4, %v938_v46, %v932_v47 }
 0x4aa   : > { %944 = vst.msk [vmem:[%s163_s10 + $0x8] sm:$0xff] %vm942_vm5, %v941_v48 }
 0x4ab   : > { %1283 = shalt.err (!%p1280_p3)
}
 0x4ac   : > { %s1284_s29 = scalar_lea.hbm %s1571_s24, 256  ;;  %s1288_s6 = scalar_lea.hbm %s1618_s3, 512 }
 0x4ad   : > { %p1285_p4 = scmp.ne.s32.totalorder %s1571_s24, %s1284_s29  ;;  %p1289_p9 = scmp.lt.s32.totalorder %s1571_s24, %s1618_s3 }
 0x4ae   : > { %p1290_p10 = scmp.lt.s32.totalorder %s1288_s6, %s1284_s29 }
 0x4af   : > { %p1286_p7 = pnand %p1285_p4, %p1400_p5 }
 0x4b0   : > { %p1291_p11 = por %p1290_p10, %p1289_p9 }
 0x4b1   : > { %p1287_p8 = pneg %p1286_p7 }
 0x4b3   : > { %p1292_p12 = pnand %p1291_p11, %p1287_p8 }
 0x4b5   : > { %1295 = shalt.err (!%p1292_p12)
}
 0x4b6   : > { %s1341_s9 = smov 128  }
 0x4b7   : > { %1175 = dma.vmem_to_hbm [thread:$0]  (%p1400_p5), %s1565_s11, 256, %s1571_s24, %s1574_s16, %s1341_s9, %s1341_s9, %s1337_s5  }
 0x4b8 PF: > { %p1181_p13 = scmp.ge.s32.totalorder %s1330_s15, 2  ;;  %s974_s10 = sand.u32 1, %s1318_s12  }
 0x4b9   : > { %s975_s17 = scalar_lea.sflag [#allocation3], %s974_s10 }
 0x4ba   : > { %p1178_p0 = pnand %p1181_p13, %p1404_p6 }
 0x4bc   : > { %p1179_p1 = pneg %p1178_p0 }
 0x4be   : > { %1313 = dma.done.wait (%p1179_p1), %s975_s17, 256  }
 0x4bf   : > { %1315 = vsyncadd (%p1179_p1), %s975_s17, 4294967040  ;;  %p13_p2 = scmp.ge.s32.totalorder %s1387_s18, 4   ;;  %s1621_s12 = smov %s1322_s13 }
 0x4c0   : > { %s1622_s13 = smov %s1326_s14  ;;  %s1623_s14 = smov %s1398_s21 }
 0x4c1   : > { %s1624_s15 = smov %s1387_s18  ;;  %15 = sbr.rel (!%p13_p2) target bundleno = 3 (0x3), region = 67 }
 0x4c6   :  { %980 = vsyncpa [#allocation3], 1 }
 0x4c7   :  { %982 = vsyncpa [#allocation3 + $0x1], 1 }

</bundles_post_ra>
